<compile_context>
chip_gen: v6e
topology: v6e:2x2x1
jax: 0.10.0
libtpu: 0.0.40
codegen_flags: <defaults>
</compile_context>

<pallas_src>
import functools

import jax
import jax.numpy as jnp
from jax.experimental import pallas as pl
from jax.experimental.pallas import tpu as pltpu


def conv_gn_mish_kernel(x_ref, wf_ref, b_ref, gamma_ref, beta_ref,
                        grp_ref, grpT_ref, o_ref, *, K, n_groups, eps):
    """One grid step == TB batch elements, channels-last layout.

    x_ref    : (TB, Lp, C_in)    zero-padded, channels-last input slab
    wf_ref   : (K*C_in, C_out)   im2col weight: wf[k*C_in + c, o] = w[o, c, k]
    b_ref    : (1, C_out)        conv bias
    gamma_ref: (1, C_out)        GroupNorm scale
    beta_ref : (1, C_out)        GroupNorm shift
    grp_ref  : (C_out, G)        one-hot channel -> group matrix
    grpT_ref : (G, C_out)        its transpose (group -> channel broadcast)
    o_ref    : (TB, L, C_out)
    """
    TB, L, C_out = o_ref.shape
    C_in = x_ref.shape[2]
    gs = C_out // n_groups

    x = x_ref[...]                                    # (TB, Lp, C_in)

    # ---- Conv1d as ONE im2col matmul on the MXU ---------------------------
    # K statically shifted views stacked along the contraction axis so the MXU
    # contracts over C_in*K in a single pass (not K shallow passes).
    taps = [x[:, k:k + L, :] for k in range(K)]       # each (TB, L, C_in)
    xcol = jnp.concatenate(taps, axis=-1)             # (TB, L, K*C_in)
    xcol = xcol.reshape(TB * L, K * C_in)             # tile-aligned collapse
    acc = jnp.dot(xcol, wf_ref[...],
                  preferred_element_type=jnp.float32)  # (TB*L, C_out)
    acc = acc + b_ref[...]                            # sublane broadcast: free

    # ---- GroupNorm, fully vectorized --------------------------------------
    y3 = acc.reshape(TB, L, C_out)                    # split is 8-aligned (L%8==0)
    s1 = jnp.sum(y3, axis=1)                          # (TB, C_out)
    s2 = jnp.sum(y3 * y3, axis=1)                     # (TB, C_out)
    grp = grp_ref[...]                                # (C_out, G) one-hot
    inv_n = 1.0 / (L * gs)
    mean_g = jnp.dot(s1, grp, preferred_element_type=jnp.float32) * inv_n
    msq_g = jnp.dot(s2, grp, preferred_element_type=jnp.float32) * inv_n
    var_g = msq_g - mean_g * mean_g                   # biased var (PyTorch GN)
    inv_g = jax.lax.rsqrt(var_g + eps)                # (TB, G)
    # Scatter per-group stats back to per-channel lanes via the one-hot
    # transpose (exact copy per channel; avoids lane-splitting reshapes).
    mean_c = jnp.dot(mean_g, grpT_ref[...], preferred_element_type=jnp.float32)
    inv_c = jnp.dot(inv_g, grpT_ref[...], preferred_element_type=jnp.float32)
    yn = (y3 - mean_c[:, None, :]) * inv_c[:, None, :]
    yn = yn * gamma_ref[...] + beta_ref[...]          # (1, C_out): lane-aligned

    # ---- Mish: y * tanh(softplus(y)), one transcendental ------------------
    # tanh(softplus(y)) rewritten as a rational function of t = exp(-|y|):
    #   y >= 0 : (1 + 2t) / (1 + 2t + 2t^2)
    #   y <  0 : (2t + t^2) / (2 + 2t + t^2)
    # Overflow-free (t <= 1), matches exp+log1p+tanh to ~1 ulp, but uses a
    # single EUP op instead of three.
    t = jnp.exp(-jnp.abs(yn))
    pos = yn >= 0
    num = jnp.where(pos, 1.0 + 2.0 * t, t * (2.0 + t))
    den = jnp.where(pos, 1.0 + 2.0 * t + 2.0 * t * t, 2.0 + t * (2.0 + t))
    # NOTE: pl.reciprocal(den, approx=True) would push the divide onto the EUP
    # with ~1e-4 relative error; exact division keeps the f32 check tight.
    out = yn * (num / den)

    o_ref[...] = out.astype(o_ref.dtype)


def conv1d_block(x, w, b, gamma, beta, *, n_groups=8, eps=1e-5):
    """x: (B, C_in, L); w: (C_out, C_in, K); b/gamma/beta: (C_out,).

    Returns (B, C_out, L), matching nn.Conv1d -> nn.GroupNorm -> nn.Mish."""
    B, C_in, L = x.shape
    C_out, _, K = w.shape
    assert K % 2 == 1, "padding=K//2 only reproduces PyTorch length for odd K"
    assert C_out % n_groups == 0
    pad = K // 2
    Lp = L + 2 * pad

    # Layout plumbing in XLA (one fused copy): channels-last + zero pad along L.
    x2 = jnp.pad(jnp.transpose(x, (0, 2, 1)), ((0, 0), (pad, pad), (0, 0)))
    # im2col-flattened weight: wf[k*C_in + c, o] = w[o, c, k]; lanes = C_out.
    wf = jnp.transpose(w, (2, 1, 0)).reshape(K * C_in, C_out)
    b2 = b.reshape(1, C_out)
    g2 = gamma.reshape(1, C_out)
    be2 = beta.reshape(1, C_out)
    # One-hot channel->group matrix so GroupNorm group reductions / broadcasts
    # become tiny MXU matmuls inside the kernel.
    gids = jnp.arange(C_out) // (C_out // n_groups)
    grp = jax.nn.one_hot(gids, n_groups, dtype=jnp.float32)   # (C_out, G)
    grpT = grp.T                                              # (G, C_out)

    # TB batch elements per grid step (amortize per-step overhead). For very
    # large shapes, shrink TB / raise vmem_limit_bytes (v7x: 64 MiB VMEM).
    TB = 1
    for cand in (8, 4, 2, 1):
        if B % cand == 0:
            TB = cand
            break

    kernel = functools.partial(conv_gn_mish_kernel,
                               K=K, n_groups=n_groups, eps=eps)

    out = pl.pallas_call(
        kernel,
        out_shape=jax.ShapeDtypeStruct((B, L, C_out), x.dtype),
        grid_spec=pltpu.PrefetchScalarGridSpec(
            num_scalar_prefetch=0,
            grid=(B // TB,),
            in_specs=[
                pl.BlockSpec((TB, Lp, C_in), lambda i: (i, 0, 0)),
                pl.BlockSpec((K * C_in, C_out), lambda i: (0, 0)),
                pl.BlockSpec((1, C_out), lambda i: (0, 0)),
                pl.BlockSpec((1, C_out), lambda i: (0, 0)),
                pl.BlockSpec((1, C_out), lambda i: (0, 0)),
                pl.BlockSpec((C_out, n_groups), lambda i: (0, 0)),
                pl.BlockSpec((n_groups, C_out), lambda i: (0, 0)),
            ],
            out_specs=pl.BlockSpec((TB, L, C_out), lambda i: (i, 0, 0)),
        ),
        compiler_params=pltpu.CompilerParams(
            dimension_semantics=("parallel",)),
    )(x2, wf, b2, g2, be2, grp, grpT)

    # Back to PyTorch NCL layout (wrapper-side layout plumbing).
    return jnp.transpose(out, (0, 2, 1))


def reference(x, w, b, gamma, beta, *, n_groups=8, eps=1e-5):
    """Pure-JAX reference of Conv1d -> GroupNorm -> Mish."""
    pad = w.shape[2] // 2
    y = jax.lax.conv_general_dilated(
        x, w, window_strides=(1,), padding=[(pad, pad)],
        dimension_numbers=("NCH", "OIH", "NCH"))
    y = y + b[None, :, None]
    B, C, L = y.shape
    yg = y.reshape(B, n_groups, -1)
    mu = yg.mean(axis=-1, keepdims=True)
    var = ((yg - mu) ** 2).mean(axis=-1, keepdims=True)
    yn = ((yg - mu) * jax.lax.rsqrt(var + eps)).reshape(B, C, L)
    yn = yn * gamma[None, :, None] + beta[None, :, None]
    return yn * jnp.tanh(jnp.log1p(jnp.exp(yn)))


if __name__ == "__main__":
    # Small shapes consistent with the module.
    B, C_in, C_out, L, K, n_groups = 2, 4, 16, 16, 3, 8

    key = jax.random.PRNGKey(0)
    kx, kw, kb = jax.random.split(key, 3)

    x = jax.random.normal(kx, (B, C_in, L), jnp.float32)
    fan_in = C_in * K
    w = jax.random.normal(kw, (C_out, C_in, K), jnp.float32) / jnp.sqrt(fan_in)
    b = 0.1 * jax.random.normal(kb, (C_out,), jnp.float32)
    gamma = jnp.ones((C_out,), jnp.float32)   # GroupNorm affine init
    beta = jnp.zeros((C_out,), jnp.float32)

    out = conv1d_block(x, w, b, gamma, beta, n_groups=n_groups)
    out = jax.block_until_ready(out)

    ref = reference(x, w, b, gamma, beta, n_groups=n_groups)
    assert out.shape == (B, C_out, L)
    # One-pass variance + rational Mish differ from the reference by a few
    # 1e-6; 1e-4 gives safe headroom while still catching any real bug.
    err = jnp.max(jnp.abs(out - ref))
    assert jnp.allclose(out, ref, atol=1e-4, rtol=1e-4), f"max err {err}"

    print("KERNEL_OK")
</pallas_src>

<mosaic_0001>
module attributes {stable_mosaic.version = 11 : i64} {
  func.func @conv_gn_mish_kernel(%arg0: i32, %arg1: memref<2x18x4xf32, #tpu.memory_space<vmem>>, %arg2: memref<12x16xf32, #tpu.memory_space<vmem>>, %arg3: memref<1x16xf32, #tpu.memory_space<vmem>>, %arg4: memref<1x16xf32, #tpu.memory_space<vmem>>, %arg5: memref<1x16xf32, #tpu.memory_space<vmem>>, %arg6: memref<16x8xf32, #tpu.memory_space<vmem>>, %arg7: memref<8x16xf32, #tpu.memory_space<vmem>>, %arg8: memref<2x16x16xf32, #tpu.memory_space<vmem>>) attributes {dimension_semantics = [#tpu.dimension_semantics<parallel>], iteration_bounds = array<i64: 1>, scalar_prefetch = 0 : i64, scratch_operands = 0 : i64, tpu.core_type = #tpu.core_type<tc>, window_params = [{transform_indices = @transform_0, window_bounds = array<i64: 2, 18, 4>}, {pipeline_mode = #tpu.pipeline_mode<synchronous>, transform_indices = @transform_1, window_bounds = array<i64: 12, 16>}, {pipeline_mode = #tpu.pipeline_mode<synchronous>, transform_indices = @transform_2, window_bounds = array<i64: 1, 16>}, {pipeline_mode = #tpu.pipeline_mode<synchronous>, transform_indices = @transform_3, window_bounds = array<i64: 1, 16>}, {pipeline_mode = #tpu.pipeline_mode<synchronous>, transform_indices = @transform_4, window_bounds = array<i64: 1, 16>}, {pipeline_mode = #tpu.pipeline_mode<synchronous>, transform_indices = @transform_5, window_bounds = array<i64: 16, 8>}, {pipeline_mode = #tpu.pipeline_mode<synchronous>, transform_indices = @transform_6, window_bounds = array<i64: 8, 16>}, {transform_indices = @transform_7, window_bounds = array<i64: 2, 16, 16>}]} {
    %c0 = arith.constant 0 : index
    %c0_0 = arith.constant 0 : index
    %c0_1 = arith.constant 0 : index
    %0 = vector.load %arg1[%c0, %c0_0, %c0_1] : memref<2x18x4xf32, #tpu.memory_space<vmem>>, vector<2x18x4xf32>
    %1 = vector.extract_strided_slice %0 {offsets = [0, 0, 0], sizes = [2, 16, 4], strides = [1, 1, 1]} : vector<2x18x4xf32> to vector<2x16x4xf32>
    %2 = vector.extract_strided_slice %0 {offsets = [0, 1, 0], sizes = [2, 16, 4], strides = [1, 1, 1]} : vector<2x18x4xf32> to vector<2x16x4xf32>
    %3 = vector.extract_strided_slice %0 {offsets = [0, 2, 0], sizes = [2, 16, 4], strides = [1, 1, 1]} : vector<2x18x4xf32> to vector<2x16x4xf32>
    %4 = tpu.concatenate %1, %2, %3 in 2 : vector<2x16x4xf32>, vector<2x16x4xf32>, vector<2x16x4xf32> -> vector<2x16x12xf32>
    %5 = vector.shape_cast %4 : vector<2x16x12xf32> to vector<32x12xf32>
    %c0_2 = arith.constant 0 : index
    %c0_3 = arith.constant 0 : index
    %6 = vector.load %arg2[%c0_2, %c0_3] : memref<12x16xf32, #tpu.memory_space<vmem>>, vector<12x16xf32>
    %cst = arith.constant dense<0.000000e+00> : vector<32x16xf32>
    %7 = tpu.matmul %5, %6, %cst {dimension_numbers = #tpu.dot_dimension_numbers<[1], [0], [0], [1], [0, 0, 1, 1], [], []>} : vector<32x12xf32>, vector<12x16xf32>, vector<32x16xf32> -> vector<32x16xf32>
    %c0_4 = arith.constant 0 : index
    %c0_5 = arith.constant 0 : index
    %8 = vector.load %arg3[%c0_4, %c0_5] : memref<1x16xf32, #tpu.memory_space<vmem>>, vector<1x16xf32>
    %9 = vector.broadcast %8 : vector<1x16xf32> to vector<32x16xf32>
    %10 = arith.addf %7, %9 : vector<32x16xf32>
    %11 = vector.shape_cast %10 : vector<32x16xf32> to vector<2x16x16xf32>
    %cst_6 = arith.constant dense<0.000000e+00> : vector<2x16xf32>
    %12 = vector.multi_reduction <add>, %11, %cst_6 [1] : vector<2x16x16xf32> to vector<2x16xf32>
    %13 = arith.mulf %11, %11 : vector<2x16x16xf32>
    %cst_7 = arith.constant dense<0.000000e+00> : vector<2x16xf32>
    %14 = vector.multi_reduction <add>, %13, %cst_7 [1] : vector<2x16x16xf32> to vector<2x16xf32>
    %c0_8 = arith.constant 0 : index
    %c0_9 = arith.constant 0 : index
    %15 = vector.load %arg6[%c0_8, %c0_9] : memref<16x8xf32, #tpu.memory_space<vmem>>, vector<16x8xf32>
    %cst_10 = arith.constant dense<0.000000e+00> : vector<2x8xf32>
    %16 = tpu.matmul %12, %15, %cst_10 {dimension_numbers = #tpu.dot_dimension_numbers<[1], [0], [0], [1], [0, 0, 1, 1], [], []>} : vector<2x16xf32>, vector<16x8xf32>, vector<2x8xf32> -> vector<2x8xf32>
    %cst_11 = arith.constant 3.125000e-02 : f32
    %17 = vector.broadcast %cst_11 : f32 to vector<2x8xf32>
    %18 = arith.mulf %16, %17 : vector<2x8xf32>
    %cst_12 = arith.constant dense<0.000000e+00> : vector<2x8xf32>
    %19 = tpu.matmul %14, %15, %cst_12 {dimension_numbers = #tpu.dot_dimension_numbers<[1], [0], [0], [1], [0, 0, 1, 1], [], []>} : vector<2x16xf32>, vector<16x8xf32>, vector<2x8xf32> -> vector<2x8xf32>
    %cst_13 = arith.constant 3.125000e-02 : f32
    %20 = vector.broadcast %cst_13 : f32 to vector<2x8xf32>
    %21 = arith.mulf %19, %20 : vector<2x8xf32>
    %22 = arith.mulf %18, %18 : vector<2x8xf32>
    %23 = arith.subf %21, %22 : vector<2x8xf32>
    %cst_14 = arith.constant 9.99999974E-6 : f32
    %24 = vector.broadcast %cst_14 : f32 to vector<2x8xf32>
    %25 = arith.addf %23, %24 : vector<2x8xf32>
    %26 = math.rsqrt %25 : vector<2x8xf32>
    %c0_15 = arith.constant 0 : index
    %c0_16 = arith.constant 0 : index
    %27 = vector.load %arg7[%c0_15, %c0_16] : memref<8x16xf32, #tpu.memory_space<vmem>>, vector<8x16xf32>
    %cst_17 = arith.constant dense<0.000000e+00> : vector<2x16xf32>
    %28 = tpu.matmul %18, %27, %cst_17 {dimension_numbers = #tpu.dot_dimension_numbers<[1], [0], [0], [1], [0, 0, 1, 1], [], []>} : vector<2x8xf32>, vector<8x16xf32>, vector<2x16xf32> -> vector<2x16xf32>
    %c0_18 = arith.constant 0 : index
    %c0_19 = arith.constant 0 : index
    %29 = vector.load %arg7[%c0_18, %c0_19] : memref<8x16xf32, #tpu.memory_space<vmem>>, vector<8x16xf32>
    %cst_20 = arith.constant dense<0.000000e+00> : vector<2x16xf32>
    %30 = tpu.matmul %26, %29, %cst_20 {dimension_numbers = #tpu.dot_dimension_numbers<[1], [0], [0], [1], [0, 0, 1, 1], [], []>} : vector<2x8xf32>, vector<8x16xf32>, vector<2x16xf32> -> vector<2x16xf32>
    %31 = vector.shape_cast %28 : vector<2x16xf32> to vector<2x1x16xf32>
    %32 = vector.broadcast %31 : vector<2x1x16xf32> to vector<2x16x16xf32>
    %33 = arith.subf %11, %32 : vector<2x16x16xf32>
    %34 = vector.shape_cast %30 : vector<2x16xf32> to vector<2x1x16xf32>
    %35 = vector.broadcast %34 : vector<2x1x16xf32> to vector<2x16x16xf32>
    %36 = arith.mulf %33, %35 : vector<2x16x16xf32>
    %c0_21 = arith.constant 0 : index
    %c0_22 = arith.constant 0 : index
    %37 = vector.load %arg4[%c0_21, %c0_22] : memref<1x16xf32, #tpu.memory_space<vmem>>, vector<1x16xf32>
    %38 = vector.shape_cast %37 : vector<1x16xf32> to vector<1x1x16xf32>
    %39 = vector.broadcast %38 : vector<1x1x16xf32> to vector<2x16x16xf32>
    %40 = arith.mulf %36, %39 : vector<2x16x16xf32>
    %c0_23 = arith.constant 0 : index
    %c0_24 = arith.constant 0 : index
    %41 = vector.load %arg5[%c0_23, %c0_24] : memref<1x16xf32, #tpu.memory_space<vmem>>, vector<1x16xf32>
    %42 = vector.shape_cast %41 : vector<1x16xf32> to vector<1x1x16xf32>
    %43 = vector.broadcast %42 : vector<1x1x16xf32> to vector<2x16x16xf32>
    %44 = arith.addf %40, %43 : vector<2x16x16xf32>
    %45 = math.absf %44 : vector<2x16x16xf32>
    %cst_25 = arith.constant 0.000000e+00 : f32
    %46 = vector.broadcast %cst_25 : f32 to vector<2x16x16xf32>
    %47 = arith.subf %46, %45 : vector<2x16x16xf32>
    %48 = math.exp %47 : vector<2x16x16xf32>
    %cst_26 = arith.constant 0.000000e+00 : f32
    %49 = vector.broadcast %cst_26 : f32 to vector<2x16x16xf32>
    %50 = arith.cmpf oge, %44, %49 : vector<2x16x16xf32>
    %cst_27 = arith.constant 2.000000e+00 : f32
    %51 = vector.broadcast %cst_27 : f32 to vector<2x16x16xf32>
    %52 = arith.mulf %51, %48 : vector<2x16x16xf32>
    %cst_28 = arith.constant 1.000000e+00 : f32
    %53 = vector.broadcast %cst_28 : f32 to vector<2x16x16xf32>
    %54 = arith.addf %53, %52 : vector<2x16x16xf32>
    %cst_29 = arith.constant 2.000000e+00 : f32
    %55 = vector.broadcast %cst_29 : f32 to vector<2x16x16xf32>
    %56 = arith.addf %55, %48 : vector<2x16x16xf32>
    %57 = arith.mulf %48, %56 : vector<2x16x16xf32>
    %58 = arith.select %50, %54, %57 : vector<2x16x16xi1>, vector<2x16x16xf32>
    %cst_30 = arith.constant 2.000000e+00 : f32
    %59 = vector.broadcast %cst_30 : f32 to vector<2x16x16xf32>
    %60 = arith.mulf %59, %48 : vector<2x16x16xf32>
    %cst_31 = arith.constant 1.000000e+00 : f32
    %61 = vector.broadcast %cst_31 : f32 to vector<2x16x16xf32>
    %62 = arith.addf %61, %60 : vector<2x16x16xf32>
    %cst_32 = arith.constant 2.000000e+00 : f32
    %63 = vector.broadcast %cst_32 : f32 to vector<2x16x16xf32>
    %64 = arith.mulf %63, %48 : vector<2x16x16xf32>
    %65 = arith.mulf %64, %48 : vector<2x16x16xf32>
    %66 = arith.addf %62, %65 : vector<2x16x16xf32>
    %cst_33 = arith.constant 2.000000e+00 : f32
    %67 = vector.broadcast %cst_33 : f32 to vector<2x16x16xf32>
    %68 = arith.addf %67, %48 : vector<2x16x16xf32>
    %69 = arith.mulf %48, %68 : vector<2x16x16xf32>
    %cst_34 = arith.constant 2.000000e+00 : f32
    %70 = vector.broadcast %cst_34 : f32 to vector<2x16x16xf32>
    %71 = arith.addf %70, %69 : vector<2x16x16xf32>
    %72 = arith.select %50, %66, %71 : vector<2x16x16xi1>, vector<2x16x16xf32>
    %73 = arith.divf %58, %72 : vector<2x16x16xf32>
    %74 = arith.mulf %44, %73 : vector<2x16x16xf32>
    %c0_35 = arith.constant 0 : index
    %c0_36 = arith.constant 0 : index
    %c0_37 = arith.constant 0 : index
    %75 = vector.load %arg8[%c0_35, %c0_36, %c0_37] : memref<2x16x16xf32, #tpu.memory_space<vmem>>, vector<2x16x16xf32>
    tpu.vector_store %arg8[%c0_35, %c0_36, %c0_37], %74 {strides = array<i32>} : memref<2x16x16xf32, #tpu.memory_space<vmem>>, vector<2x16x16xf32>,
    return
  }
  func.func @transform_0(%arg0: i32) -> (i32, i32, i32) {
    %c0_i32 = arith.constant 0 : i32
    %c0_i32_0 = arith.constant 0 : i32
    %c0_i32_1 = arith.constant 0 : i32
    return %arg0, %c0_i32, %c0_i32_0 : i32, i32, i32
  }
  func.func @transform_1(%arg0: i32) -> (i32, i32) {
    %c0_i32 = arith.constant 0 : i32
    %c0_i32_0 = arith.constant 0 : i32
    %c0_i32_1 = arith.constant 0 : i32
    return %c0_i32, %c0_i32_0 : i32, i32
  }
  func.func @transform_2(%arg0: i32) -> (i32, i32) {
    %c0_i32 = arith.constant 0 : i32
    %c0_i32_0 = arith.constant 0 : i32
    %c0_i32_1 = arith.constant 0 : i32
    return %c0_i32, %c0_i32_0 : i32, i32
  }
  func.func @transform_3(%arg0: i32) -> (i32, i32) {
    %c0_i32 = arith.constant 0 : i32
    %c0_i32_0 = arith.constant 0 : i32
    %c0_i32_1 = arith.constant 0 : i32
    return %c0_i32, %c0_i32_0 : i32, i32
  }
  func.func @transform_4(%arg0: i32) -> (i32, i32) {
    %c0_i32 = arith.constant 0 : i32
    %c0_i32_0 = arith.constant 0 : i32
    %c0_i32_1 = arith.constant 0 : i32
    return %c0_i32, %c0_i32_0 : i32, i32
  }
  func.func @transform_5(%arg0: i32) -> (i32, i32) {
    %c0_i32 = arith.constant 0 : i32
    %c0_i32_0 = arith.constant 0 : i32
    %c0_i32_1 = arith.constant 0 : i32
    return %c0_i32, %c0_i32_0 : i32, i32
  }
  func.func @transform_6(%arg0: i32) -> (i32, i32) {
    %c0_i32 = arith.constant 0 : i32
    %c0_i32_0 = arith.constant 0 : i32
    %c0_i32_1 = arith.constant 0 : i32
    return %c0_i32, %c0_i32_0 : i32, i32
  }
  func.func @transform_7(%arg0: i32) -> (i32, i32, i32) {
    %c0_i32 = arith.constant 0 : i32
    %c0_i32_0 = arith.constant 0 : i32
    %c0_i32_1 = arith.constant 0 : i32
    return %arg0, %c0_i32, %c0_i32_0 : i32, i32, i32
  }
}

</mosaic_0001>

<bundles_post_ra>
// kernel: tpu_custom_call.1
= control target key start
LH: loop header
LB: loop body
LE: loop exit
PB: predicated region body
PF: predicated region fallthrough
CT: control target
= control target key end

     0   :  { %vm62_vm0 = vcmask 1045504   ;;  %vm39_vm1 = vcmask 1046528   ;;  %s846_s13 = smov 8   ;;  %s847_s14 = smov 4   ;;  %s1061_s0 = inlined_call_operand.vmem [shape: f32[2,18,4], index: 0, kind: input, shape index: {}]   ;;  %s1062_s1 = inlined_call_operand.vmem [shape: f32[12,16], index: 1, kind: input, shape index: {}]   ;;  %s1063_s2 = inlined_call_operand.vmem [shape: f32[1,16], index: 2, kind: input, shape index: {}]   ;;  %s1064_s3 = inlined_call_operand.vmem [shape: f32[1,16], index: 3, kind: input, shape index: {}]   ;;  %s1065_s4 = inlined_call_operand.vmem [shape: f32[1,16], index: 4, kind: input, shape index: {}]   ;;  %s1066_s5 = inlined_call_operand.vmem [shape: f32[16,8], index: 5, kind: input, shape index: {}]   ;;  %s1067_s6 = inlined_call_operand.vmem [shape: f32[8,16], index: 6, kind: input, shape index: {}]   ;;  %s1068_s7 = inlined_call_operand.hbm [shape: f32[2,16,16], index: 7, kind: output, shape index: {}]  }
   0x1   :  { %v27_v0 = vld [vmem:[%s1061_s0] sm:$0xff]  ;;  %v28_v1 = vld [vmem:[%s1061_s0 + $0x8] sm:$0xff]  ;;  %v29_v6 = vld [vmem:[%s1061_s0 + $0x10] sm:$0x3] }
   0x2   :  { %v63_v2 = vrot.slane %v27_v0, 2  ;;  %v64_v3 = vrot.slane %v28_v1, 2  ;;  %v40_v4 = vrot.slane %v27_v0, 1  ;;  %v41_v5 = vrot.slane %v28_v1, 1  ;;  %v31_v9 = vld [vmem:[%s1061_s0 + $0x20] sm:$0xff]  ;;  %v30_v11 = vld [vmem:[%s1061_s0 + $0x18] sm:$0xff] }
   0x3   :  { %v66_v7 = vrot.slane %v29_v6, 2  ;;  %v43_v8 = vrot.slane %v29_v6, 1  ;;  %v32_v10 = vld [vmem:[%s1061_s0 + $0x28] sm:$0x3]  ;;  %v46_v14 = vrot.slane %v31_v9, 1 }
   0x4   :  { %v65_v12 = vsel %vm62_vm0, %v63_v2, %v64_v3  ;;  %v42_v13 = vsel %vm39_vm1, %v40_v4, %v41_v5  ;;  %v96_v15 = vld [vmem:[%s1062_s1 + $0x8] sm:$0xf] }
   0x5   :  { %73 = vrot.lane.b32.xlu1 %v65_v12, %s846_s13  ;;  %50 = vrot.lane.b32.xlu0 %v42_v13, %s847_s14 }
   0x6   :  { %12 = vsyncpa [#allocation3], 0  ;;  %v67_v16 = vsel %vm62_vm0, %v64_v3, %v66_v7  ;;  %v44_v17 = vsel %vm39_vm1, %v41_v5, %v43_v8  ;;  %v48_v18 = vrot.slane %v32_v10, 1  ;;  %v45_v19 = vrot.slane %v30_v11, 1  ;;  %v95_v20 = vld [vmem:[%s1062_s1] sm:$0xff]  ;;  %v944_v44 = vld [vmem:[%s1066_s5 + $0x8] sm:$0xff] }
   0x7   :  { %vm117_vm2 = vcmask 1043456   ;;  %v69_v21 = vrot.slane %v31_v9, 2  ;;  %v71_v24 = vrot.slane %v32_v10, 2  ;;  %v68_v25 = vrot.slane %v30_v11, 2  ;;  %v950_v46 = vld [vmem:[%s1066_s5] sm:$0xff] }
   0x8   :  { %765 = vmatprep.subr.msk.mxu0 %vm117_vm2, %v96_v15  ;;  %v49_v22 = vsel %vm39_vm1, %v46_v14, %v48_v18  ;;  %v47_v23 = vsel %vm39_vm1, %v45_v19, %v46_v14  ;;  %vm85_vm3 = vcmask 31744   ;;  %vm90_vm4 = vcmask 64512   ;;  %v737_v47 = vld [vmem:[%s1063_s2] ss:$0 sm:$0xff] }
   0x9   :  { %75 = vrot.lane.b32.xlu1 %v67_v16, %s846_s13  ;;  %52 = vrot.lane.b32.xlu0 %v44_v17, %s847_s14  ;;  %v72_v26 = vsel %vm62_vm0, %v69_v21, %v71_v24  ;;  %v70_v27 = vsel %vm62_vm0, %v68_v25, %v69_v21  ;;  %vm104_vm5 = vcmask 97280   ;;  %v848_v45 = vmov 0.0  }
   0xa   :  { %766 = vmatpush3.msk.msra.mxu0 %vm117_vm2, %v96_v15  ;;  %775 = vmatprep.subr.mxu1 %v848_v45  ;;  %vm849_vm6 = vmmov 0   ;;  %vm206_vm7 = vcmask 130048   ;;  %vm251_vm8 = vcmask 1041409  }
   0xb   :  { %767 = vmatprep.subr.mxu0 %v95_v20  ;;  %779 = vmatprep.mubr.msk.f32.mxu1 %vm849_vm6, %v848_v45 }
   0xc   :  { %768 = vmatpush3.msra.mxu0 %v95_v20  ;;  %776 = vmatpush3.msra.mxu1 %v944_v44 }
   0xd   :  { %56 = vrot.lane.b32.xlu1 %v49_v22, %s847_s14  ;;  %54 = vrot.lane.b32.xlu0 %v47_v23, %s847_s14 }
   0xe   :  { %789 = vmatprep.subr.mxu0 %v848_v45  ;;  %777 = vmatprep.subr.mxu1 %v848_v45 }
   0xf   :  { %778 = vmatpush3.msra.mxu1 %v950_v46 }
  0x10   :  { %782 = vmatprep.subr.mxu1 %v848_v45 }
  0x11   :  { %79 = vrot.lane.b32.xlu1 %v72_v26, %s846_s13  ;;  %77 = vrot.lane.b32.xlu0 %v70_v27, %s846_s13 }
  0x77   :  { %v74_v28 = vpop.permute.xlu1 %73  ;;  %v51_v29 = vpop.permute.xlu0 %50 }
  0x78   :  { %v86_v30 = vsel %vm85_vm3, %v27_v0, %v51_v29 }
  0x79   :  { %v91_v31 = vsel %vm90_vm4, %v86_v30, %v74_v28 }
  0x7a   :  { %769 = vmatprep.mubr.msk.f32.mxu0 %vm104_vm5, %v91_v31 }
  0x7b   :  { %v76_v32 = vpop.permute.xlu1 %75  ;;  %v53_v33 = vpop.permute.xlu0 %52 }
  0x7c   :  { %v87_v34 = vsel %vm85_vm3, %v28_v1, %v53_v33 }
  0x7d   :  { %v92_v35 = vsel %vm90_vm4, %v87_v34, %v76_v32  ;;  %v406_v34 = vld [vmem:[%s1067_s6] sm:$0xff] }
  0x7e   :  { %770 = vmatmul.mubr.msk.f32.vlgmr.msra.gmra.mxu0 %vm104_vm5, %v92_v35 }
  0x7f   :  { %v57_v36 = vpop.permute.xlu1 %56  ;;  %v55_v37 = vpop.permute.xlu0 %54  ;;  %790 = vmatpush3.msra.mxu0 %v406_v34 }
  0x80   :  { %v89_v38 = vsel %vm85_vm3, %v31_v9, %v57_v36  ;;  %v88_v39 = vsel %vm85_vm3, %v30_v11, %v55_v37 }
  0x83   :  { %v80_v40 = vpop.permute.xlu1 %79  ;;  %v78_v41 = vpop.permute.xlu0 %77 }
  0x84   :  { %v94_v42 = vsel %vm90_vm4, %v89_v38, %v80_v40  ;;  %v93_v43 = vsel %vm90_vm4, %v88_v39, %v78_v41 }
  0x85   :  { %772 = vmatprep.mubr.msk.f32.mxu0 %vm104_vm5, %v93_v43 }
  0x86   :  { %773 = vmatmul.mubr.msk.f32.gmra.mxu0 %vm104_vm5, %v94_v42 }
  0x87   :  { %791 = vmatprep.mubr.msk.f32.mxu0 %vm849_vm6, %v848_v45 }
 0x13e   :  { %v771_v48 = vpop.f32.mrf.mxu0 }
 0x13f   :  { %v964_v49 = vadd.f32 %v771_v48, %v737_v47  ;;  %v557_v48 = vlaneseq }
 0x140   :  { %v187_v50 = vpop.f32.mrf.mxu0 }
 0x141   :  { %v226_v51 = vmul.f32 %v964_v49, %v964_v49  ;;  %v968_v52 = vadd.f32 %v737_v47, %v187_v50  ;;  %v208_v53 = vsel %vm206_vm7, %v964_v49, 0.0 }
 0x143   :  { %v207_v54 = vsel %vm206_vm7, %v968_v52, 0.0  ;;  %v225_v55 = vmul.f32 %v968_v52, %v968_v52  ;;  %v230_v57 = vsel %vm206_vm7, %v226_v51, 0.0 }
 0x144   :  { %v209_v56 = vadd.f32 %v208_v53, %v207_v54  ;;  %v558_v53 = vshrl.u32 %v557_v48, 7 }
 0x145   :  { %v229_v58 = vsel %vm206_vm7, %v225_v55, 0.0 }
 0x146   :  { %v210_v59 = vrot.slane %v209_v56, 4  ;;  %v231_v60 = vadd.f32 %v230_v57, %v229_v58  ;;  %v774_v61 = vpop.f32.mrf.mxu0  ;;  %v578_v58 = vsub.s32 0, %v558_v53 }
 0x147   :  { %v978_v62 = vadd.f32 %v774_v61, %v737_v47 }
 0x148   :  { %v211_v63 = vadd.f32 %v210_v59, %v209_v56  ;;  %v232_v0 = vrot.slane %v231_v60, 4  ;;  %v197_v1 = vpop.f32.mrf.mxu0 }
 0x149   :  { %v228_v2 = vmul.f32 %v978_v62, %v978_v62  ;;  %v982_v3 = vadd.f32 %v737_v47, %v197_v1  ;;  %v217_v4 = vsel %vm206_vm7, %v978_v62, 0.0 }
 0x14a   :  { %v212_v7 = vrot.slane %v211_v63, 2  ;;  %v233_v8 = vadd.f32 %v232_v0, %v231_v60 }
 0x14b   :  { %v216_v5 = vsel %vm206_vm7, %v982_v3, 0.0  ;;  %v227_v6 = vmul.f32 %v982_v3, %v982_v3  ;;  %v239_v10 = vsel %vm206_vm7, %v228_v2, 0.0 }
 0x14c   :  { %v218_v9 = vadd.f32 %v217_v4, %v216_v5  ;;  %v234_v14 = vrot.slane %v233_v8, 2  ;;  %v213_v17 = vadd.f32 %v212_v7, %v211_v63 }
 0x14d   :  { %v238_v11 = vsel %vm206_vm7, %v227_v6, 0.0 }
 0x14e   :  { %v219_v12 = vrot.slane %v218_v9, 4  ;;  %v240_v13 = vadd.f32 %v239_v10, %v238_v11  ;;  %v235_v20 = vadd.f32 %v234_v14, %v233_v8  ;;  %v214_v22 = vrot.slane %v213_v17, 1  ;;  %v747_v10 = vld [vmem:[%s1064_s3] ss:$0 sm:$0xff]  ;;  %s851_s3 = smov [#allocation2]  }
 0x150   :  { %v220_v15 = vadd.f32 %v219_v12, %v218_v9  ;;  %v241_v16 = vrot.slane %v240_v13, 4  ;;  %v215_v26 = vadd.f32 %v214_v22, %v213_v17  ;;  %v236_v28 = vrot.slane %v235_v20, 1 }
 0x152   :  { %v221_v18 = vrot.slane %v220_v15, 2  ;;  %v242_v19 = vadd.f32 %v241_v16, %v240_v13  ;;  %v237_v32 = vadd.f32 %v236_v28, %v235_v20 }
 0x154   :  { %v243_v21 = vrot.slane %v242_v19, 2  ;;  %v222_v23 = vadd.f32 %v221_v18, %v220_v15  ;;  %v748_v15 = vld [vmem:[%s1065_s4] ss:$0 sm:$0xff]  ;;  %s726_s4 = sshll.u32 %s851_s3, 4  ;;  %s727_s4 = int_to_ptr.vmem [resolvable:$true] %s726_s4 }
 0x155   :  { %s824_s26 = scalar_lea.vmem %s727_s4, 512  ;;  %p829_p1 = scmp.lt.s32.totalorder %s727_s4, %s727_s4 }
 0x156   :  { %v244_v24 = vadd.f32 %v243_v21, %v242_v19  ;;  %v223_v25 = vrot.slane %v222_v23, 1  ;;  %p825_p0 = scmp.ne.s32.totalorder %s727_s4, %s824_s26  ;;  %p830_p2 = scmp.lt.s32.totalorder %s824_s26, %s824_s26 }
 0x158   :  { %v224_v27 = vadd.f32 %v223_v25, %v222_v23  ;;  %v245_v29 = vrot.slane %v244_v24, 1  ;;  %p831_p3 = por %p830_p2, %p829_p1 }
 0x15a   :  { %v252_v30 = vsel %vm251_vm8, %v224_v27, %v215_v26  ;;  %v246_v31 = vadd.f32 %v245_v29, %v244_v24  ;;  %p832_p4 = pnand %p831_p3, %p825_p0 }
 0x15b   :  { %780 = vmatmul.mubr.msk.f32.vlgmr.msra.gmra.mxu1 %vm206_vm7, %v252_v30 }
 0x15c   :  { %783 = vmatpush3.msra.mxu1 %v944_v44  ;;  %786 = vmatprep.mubr.msk.f32.mxu1 %vm849_vm6, %v848_v45  ;;  %v328_v33 = vsel %vm251_vm8, %v246_v31, %v237_v32 }
 0x15d   :  { %784 = vmatprep.subr.mxu1 %v848_v45 }
 0x15e   :  { %785 = vmatpush3.msra.mxu1 %v950_v46  ;;  %v850_v46 = vmov 1966171168  }
 0x15f   :  { %787 = vmatmul.mubr.msk.f32.vlgmr.msra.gmra.mxu1 %vm206_vm7, %v328_v33  ;;  %794 = vmatprep.subr.mxu1 %v848_v45  ;;  %v555_v47 = vunpack.c.l.s4 %v850_v46 }
 0x160   :  { %796 = vmatprep.mubr.msk.f32.mxu1 %vm849_vm6, %v848_v45  ;;  %795 = vmatpush3.msra.mxu1 %v406_v34 }
 0x161   :  { %v556_v51 = vunpack.c.0.s8 %v555_v47 }
 0x163   :  { %v559_v54 = vsub.s32 %v556_v51, %v558_v53 }
 0x21b   :  { %v321_v35 = vpop.f32.mrf.mxu1 }
 0x21c   :  { %v325_v36 = vmul.f32 0.03125, %v321_v35 }
 0x21d   :  { %v781_v37 = vpop.f32.mrf.mxu1 }
 0x21e   :  { %792 = vmatmul.mubr.msk.f32.vlgmr.msra.gmra.mxu0 %vm90_vm4, %v325_v36  ;;  %v402_v39 = vmul.f32 %v325_v36, %v325_v36 }
 0x21f   :  { %v397_v38 = vpop.f32.mrf.mxu1 }
 0x220   :  { %v401_v40 = vmul.f32 0.03125, %v397_v38 }
 0x221   :  { %v788_v41 = vpop.f32.mrf.mxu1 }
 0x222   :  { %v403_v42 = vsub.f32 %v401_v40, %v402_v39 }
 0x224   :  { %v404_v43 = vadd.f32 1e-05, %v403_v42 }
 0x226   :  { %806 = vrsqrt.f32 %v404_v43 }
 0x233   :  { %v807_v44 = vpop.eup %806 }
 0x234   :  { %797 = vmatmul.mubr.msk.f32.vlgmr.msra.gmra.mxu1 %vm90_vm4, %v807_v44 }
 0x2de   :  { %v476_v45 = vpop.f32.mrf.mxu0 }
 0x2df   :  { %v560_v55 = vrot.slane %v476_v45, %v559_v54 }
 0x2e0   :  { %v793_v50 = vpop.f32.mrf.mxu0 }
 0x2e1   :  { %v561_v56 = vcombine.high %v560_v55, %v560_v55  ;;  %v568_v57 = vrot.slane %v560_v55, %v559_v54 }
 0x2e3   :  { %v575_v59 = vrot.slane %v561_v56, %v559_v54  ;;  %v579_v61 = vrot.slane %v568_v57, %v578_v58 }
 0x2e5   :  { %v583_v0 = vrot.slane %v575_v59, %v578_v58  ;;  %v586_v5 = vsub.f32 %v968_v52, %v579_v61  ;;  %v587_v6 = vsub.f32 %v964_v49, %v579_v61 }
 0x2e7   :  { %v588_v9 = vsub.f32 %v982_v3, %v583_v0  ;;  %v589_v11 = vsub.f32 %v978_v62, %v583_v0 }
 0x2f4   :  { %v549_v60 = vpop.f32.mrf.mxu1 }
 0x2f5   :  { %v597_v63 = vrot.slane %v549_v60, %v559_v54 }
 0x2f6   :  { %v798_v1 = vpop.f32.mrf.mxu1 }
 0x2f7   :  { %v598_v2 = vcombine.high %v597_v63, %v597_v63  ;;  %v605_v4 = vrot.slane %v597_v63, %v559_v54 }
 0x2f9   :  { %v612_v7 = vrot.slane %v598_v2, %v559_v54  ;;  %v616_v8 = vrot.slane %v605_v4, %v578_v58 }
 0x2fb   :  { %v620_v12 = vrot.slane %v612_v7, %v578_v58  ;;  %v623_v13 = vmul.f32 %v616_v8, %v586_v5  ;;  %v624_v14 = vmul.f32 %v616_v8, %v587_v6 }
 0x2fd   :  { %v625_v52 = vmul.f32 %v620_v12, %v588_v9  ;;  %v626_v16 = vmul.f32 %v620_v12, %v589_v11  ;;  %v634_v49 = vmul.f32 %v747_v10, %v623_v13  ;;  %v635_v17 = vmul.f32 %v747_v10, %v624_v14 }
 0x2ff   :  { %v636_v18 = vmul.f32 %v747_v10, %v625_v52  ;;  %v637_v19 = vmul.f32 %v747_v10, %v626_v16  ;;  %v1017_v3 = vadd.f32 %v748_v15, %v634_v49  ;;  %v1019_v20 = vadd.f32 %v748_v15, %v635_v17 }
 0x301   :  { %v1021_v21 = vadd.f32 %v748_v15, %v636_v18  ;;  %v1023_v62 = vadd.f32 %v748_v15, %v637_v19  ;;  %v649_v22 = vand.u32 2147483647, %v1017_v3  ;;  %v650_v23 = vand.u32 2147483647, %v1019_v20 }
 0x302   :  { %vm665_vm9 = vcmp.ge.f32.partialorder %v1017_v3, 0.0  ;;  %vm666_vm10 = vcmp.ge.f32.partialorder %v1019_v20, 0.0 }
 0x303   :  { %v651_v24 = vand.u32 2147483647, %v1021_v21  ;;  %v652_v25 = vand.u32 2147483647, %v1023_v62  ;;  %v653_v26 = vsub.f32 0.0, %v649_v22  ;;  %v654_v27 = vsub.f32 0.0, %v650_v23 }
 0x304   :  { %vm667_vm11 = vcmp.ge.f32.partialorder %v1021_v21, 0.0  ;;  %vm668_vm12 = vcmp.ge.f32.partialorder %v1023_v62, 0.0 }
 0x305   :  { %v655_v28 = vsub.f32 0.0, %v651_v24  ;;  %v656_v29 = vsub.f32 0.0, %v652_v25  ;;  %v657_v30 = vmul.f32 1.442695, %v653_v26  ;;  %v659_v31 = vmul.f32 1.442695, %v654_v27 }
 0x307   :  { %808 = vpow2.f32 %v657_v30  ;;  %v661_v32 = vmul.f32 1.442695, %v655_v28  ;;  %v663_v33 = vmul.f32 1.442695, %v656_v29 }
 0x308   :  { %810 = vpow2.f32 %v659_v31 }
 0x309   :  { %812 = vpow2.f32 %v661_v32 }
 0x30a   :  { %814 = vpow2.f32 %v663_v33 }
 0x314   :  { %v809_v34 = vpop.eup %808 }
 0x315   :  { %v811_v35 = vpop.eup %810  ;;  %v669_v36 = vmul.f32 2.0, %v809_v34  ;;  %v677_v37 = vadd.f32 2.0, %v809_v34 }
 0x316   :  { %v813_v38 = vpop.eup %812  ;;  %v670_v39 = vmul.f32 2.0, %v811_v35  ;;  %v678_v40 = vadd.f32 2.0, %v811_v35 }
 0x317   :  { %v815_v41 = vpop.eup %814  ;;  %v671_v42 = vmul.f32 2.0, %v813_v38  ;;  %v673_v43 = vadd.f32 1.0, %v669_v36  ;;  %v679_v44 = vadd.f32 2.0, %v813_v38  ;;  %v681_v45 = vmul.f32 %v809_v34, %v677_v37 }
 0x318   :  { %v672_v46 = vmul.f32 2.0, %v815_v41  ;;  %v674_v47 = vadd.f32 1.0, %v670_v39  ;;  %v680_v48 = vadd.f32 2.0, %v815_v41  ;;  %v682_v50 = vmul.f32 %v811_v35, %v678_v40 }
 0x319   :  { %v675_v51 = vadd.f32 1.0, %v671_v42  ;;  %v683_v53 = vmul.f32 %v813_v38, %v679_v44  ;;  %v689_v54 = vmul.f32 %v809_v34, %v669_v36  ;;  %v690_v57 = vmul.f32 %v811_v35, %v670_v39 }
 0x31a   :  { %v676_v55 = vadd.f32 1.0, %v672_v46  ;;  %v684_v56 = vmul.f32 %v815_v41, %v680_v48  ;;  %v691_v58 = vmul.f32 %v813_v38, %v671_v42  ;;  %v692_v59 = vmul.f32 %v815_v41, %v672_v46 }
 0x31b   :  { %v693_v60 = vadd.f32 %v689_v54, %v673_v43  ;;  %v694_v61 = vadd.f32 %v690_v57, %v674_v47  ;;  %v697_v63 = vadd.f32 2.0, %v681_v45  ;;  %v698_v0 = vadd.f32 2.0, %v682_v50 }
 0x31c   :  { %v695_v1 = vadd.f32 %v691_v58, %v675_v51  ;;  %v696_v2 = vadd.f32 %v692_v59, %v676_v55  ;;  %v699_v4 = vadd.f32 2.0, %v683_v53  ;;  %v700_v5 = vadd.f32 2.0, %v684_v56 }
 0x31d   :  { %v701_v6 = vsel %vm665_vm9, %v693_v60, %v697_v63  ;;  %v702_v7 = vsel %vm666_vm10, %v694_v61, %v698_v0  ;;  %v685_v11 = vsel %vm665_vm9, %v673_v43, %v681_v45  ;;  %v686_v13 = vsel %vm666_vm10, %v674_v47, %v682_v50 }
 0x31e   :  { %v703_v8 = vsel %vm667_vm11, %v695_v1, %v699_v4  ;;  %v704_v9 = vsel %vm668_vm12, %v696_v2, %v700_v5  ;;  %816 = vrcp.f32 %v701_v6  ;;  %v687_v52 = vsel %vm667_vm11, %v675_v51, %v683_v53 }
 0x31f   :  { %818 = vrcp.f32 %v702_v7  ;;  %v688_v17 = vsel %vm668_vm12, %v676_v55, %v684_v56 }
 0x320   :  { %820 = vrcp.f32 %v703_v8 }
 0x321   :  { %822 = vrcp.f32 %v704_v9 }
 0x32b   :  { %v817_v10 = vpop.eup %816 }
 0x32c   :  { %v819_v12 = vpop.eup %818  ;;  %v706_v14 = vmul.f32 %v817_v10, %v685_v11 }
 0x32d   :  { %v821_v15 = vpop.eup %820  ;;  %v708_v16 = vmul.f32 %v819_v12, %v686_v13 }
 0x32e   :  { %v823_v49 = vpop.eup %822  ;;  %v710_v18 = vmul.f32 %v821_v15, %v687_v52  ;;  %v713_v19 = vmul.f32 %v706_v14, %v1017_v3 }
 0x32f   :  { %v712_v22 = vmul.f32 %v823_v49, %v688_v17  ;;  %v714_v23 = vmul.f32 %v708_v16, %v1019_v20 }
 0x330   :  { %v715_v24 = vmul.f32 %v710_v18, %v1021_v21  ;;  %717 = vst.msk [vmem:[#allocation2] sm:$0xff] %vm206_vm7, %v713_v19 }
 0x331   :  { %v716_v25 = vmul.f32 %v712_v22, %v1023_v62  ;;  %718 = vst.msk [vmem:[#allocation2 + $0x8] sm:$0xff] %vm206_vm7, %v714_v23 }
 0x332   :  { %719 = vst.msk [vmem:[#allocation2 + $0x10] sm:$0xff] %vm206_vm7, %v715_v24 }
 0x333   :  { %720 = vst.msk [vmem:[#allocation2 + $0x18] sm:$0xff] %vm206_vm7, %v716_v25 }
 0x334   :  { %835 = shalt.err (!%p832_p4)
}
 0x335   :  { %s852_s27 = smov 128  }
 0x336   :  { %732 = dma.vmem_to_hbm [thread:$0]  %s727_s4, 512, %s1068_s7, [#allocation3], %s852_s27, %s852_s27, %s846_s13  }
 0x337   :  { %844 = dma.done.wait [#allocation3], 512  }
 0x338   :  { %845 = vsyncadd [#allocation3], 4294966784 }
 0x339   :  { %736 = vsyncpa [#allocation3], 1 }

</bundles_post_ra>
